<compile_context>
chip_gen: v7x
topology: tpu7x:2x2x1
jax: 0.10.0
libtpu: 0.0.40
codegen_flags: <defaults>
</compile_context>

<pallas_src>
import functools

import jax
import jax.numpy as jnp
from jax.experimental import pallas as pl
from jax.experimental.pallas import tpu as pltpu

# Module hyperparameters (from the PyTorch spec)
INPUT_DIM = 28
HIDDEN_DIM = 100
LAYER_DIM = 1          # single-layer RNN; h0 is zeros so the layer dim is implicit
OUTPUT_DIM = 10


def _round_up(n, m):
    return ((n + m - 1) // m) * m


def rnn_fc_kernel(x_ref, w_ref, b_ref, out_ref, xpad_ref):
    """Sequential ReLU-RNN over time + final FC on h_T.

    x_ref   : (T*Bp, D)      bf16, time-major rows, batch padded to Bp, D unpadded
    w_ref   : (Dp+2*Hp, Hp)  bf16, rows [0:Dp)=W_ih^T, [Dp:Dp+Hp)=W_hh^T,
                             [Dp+Hp:Dp+2Hp)=W_fc^T (all zero-padded)
    b_ref   : (2, Hp)        f32, row 0 = b_ih + b_hh, row 1 = b_fc (zero-padded)
    out_ref : (Bp, Hp)       f32, fc(h_T); real block is [:B, :O]
    xpad_ref: (T*Bp, Dp)     bf16 VMEM scratch for lane-extending x to Dp
    """
    TB, D = x_ref.shape
    Dp = xpad_ref.shape[1]
    Hp = w_ref.shape[1]
    Bp = out_ref.shape[0]
    T = TB // Bp

    # Static, 128-aligned sublane slices of the packed weight buffer.
    wih = w_ref[0:Dp, :]                 # (Dp, Hp) bf16
    whh = w_ref[Dp:Dp + Hp, :]           # (Hp, Hp) bf16
    wfc = w_ref[Dp + Hp:Dp + 2 * Hp, :]  # (Hp, Hp) bf16

    b_rnn = b_ref[0:1, :]                # (1, Hp) f32
    b_out = b_ref[1:2, :]                # (1, Hp) f32

    # Zero-extend x lanes D -> Dp inside VMEM (HBM/DMA stay at the true D).
    xpad_ref[...] = jnp.zeros_like(xpad_ref)
    xpad_ref[:, 0:D] = x_ref[...]

    # Hoisted input projection (one big MXU pass, no recurrent dependency),
    # with the RNN bias folded in once.
    xp = jnp.dot(xpad_ref[...], wih,
                 preferred_element_type=jnp.float32)           # (T*Bp, Hp) f32
    xp = xp + b_rnn

    # Recurrence. h0 == 0, so step 0 is just relu(xp[0]).  Remaining steps:
    # one bf16 MXU matmul + f32 add + f32 relu + bf16 cast, statically unrolled
    # so the scheduler sees across steps (whh is loop-invariant).
    h = jnp.maximum(xp[0:Bp, :], 0.0).astype(jnp.bfloat16)     # (Bp, Hp) bf16
    for t in range(1, T):                                      # T is static (8)
        hh = jnp.dot(h, whh, preferred_element_type=jnp.float32)
        pre = xp[t * Bp:(t + 1) * Bp, :] + hh                  # f32
        h = jnp.maximum(pre, 0.0).astype(jnp.bfloat16)

    # Final FC on h_T; lane-dense (Hp == Op == 128) unmasked store.
    out = jnp.dot(h, wfc, preferred_element_type=jnp.float32) + b_out
    out_ref[...] = out.astype(out_ref.dtype)


def prepare_params(params):
    """One-time padding / transpose / bf16 cast of the model parameters.

    Returns (w_pack, b_pack) ready for the kernel.  Keep this OUT of the
    per-call forward path (the padding ops otherwise cost more than the
    kernel itself at this problem size).
    """
    w_ih, w_hh, b_ih, b_hh, w_fc, b_fc = params
    H, D = w_ih.shape
    O = w_fc.shape[0]

    Dp = _round_up(D, 128)
    Hp = _round_up(H, 128)
    Op = _round_up(O, 128)
    assert Hp == Op, "weight packing assumes padded hidden == padded output width"

    bf16 = jnp.bfloat16
    w_pack = jnp.zeros((Dp + 2 * Hp, Hp), bf16)
    w_pack = w_pack.at[:D, :H].set(w_ih.T.astype(bf16))                 # W_ih^T
    w_pack = w_pack.at[Dp:Dp + H, :H].set(w_hh.T.astype(bf16))          # W_hh^T
    w_pack = w_pack.at[Dp + Hp:Dp + Hp + H, :O].set(w_fc.T.astype(bf16))  # W_fc^T

    b_pack = jnp.zeros((2, Hp), jnp.float32)
    b_pack = b_pack.at[0, :H].set((b_ih + b_hh).astype(jnp.float32))
    b_pack = b_pack.at[1, :O].set(b_fc.astype(jnp.float32))
    return w_pack, b_pack


def rnn_model_forward(x_btd, w_pack, b_pack, *, out_dim):
    """x_btd: (B, T, D) batch-first input (like PyTorch). Returns (B, 1, O)."""
    B, T, D = x_btd.shape
    Hp = w_pack.shape[1]
    Dp = w_pack.shape[0] - 2 * Hp
    # Batch padded to one sublane group.  If deploying with large batches,
    # keep the whole batch in one kernel call (pad B up to 128/256) rather
    # than looping kernel invocations.
    Bp = _round_up(B, 8)

    # Per-call prep touches only x: time-major, pad batch rows, flatten to 2D,
    # cast to bf16.  The feature dim stays at its true width (28).
    x_tbd = jnp.transpose(x_btd, (1, 0, 2)).astype(jnp.bfloat16)        # (T, B, D)
    x_pad = jnp.zeros((T, Bp, D), jnp.bfloat16).at[:, :B, :].set(x_tbd)
    x_2d = x_pad.reshape(T * Bp, D)                                     # (T*Bp, D)

    vmem = pl.BlockSpec(memory_space=pltpu.MemorySpace.VMEM)
    out_pad = pl.pallas_call(
        rnn_fc_kernel,
        out_shape=jax.ShapeDtypeStruct((Bp, Hp), jnp.float32),
        in_specs=[vmem, vmem, vmem],
        out_specs=vmem,
        scratch_shapes=[pltpu.VMEM((T * Bp, Dp), jnp.bfloat16)],
    )(x_2d, w_pack, b_pack)

    # Match PyTorch: self.fc(output[:, -1:]) -> (B, 1, O)
    return out_pad[:B, :out_dim].reshape(B, 1, out_dim)


rnn_forward_jit = jax.jit(rnn_model_forward, static_argnames=("out_dim",))


def init_params(key, input_dim, hidden_dim, output_dim):
    """Deterministic init mimicking PyTorch's uniform(-1/sqrt(H), 1/sqrt(H))."""
    ks = jax.random.split(key, 6)
    k_rnn = 1.0 / jnp.sqrt(hidden_dim)
    k_fc = 1.0 / jnp.sqrt(hidden_dim)
    w_ih = jax.random.uniform(ks[0], (hidden_dim, input_dim), jnp.float32, -k_rnn, k_rnn)
    w_hh = jax.random.uniform(ks[1], (hidden_dim, hidden_dim), jnp.float32, -k_rnn, k_rnn)
    b_ih = jax.random.uniform(ks[2], (hidden_dim,), jnp.float32, -k_rnn, k_rnn)
    b_hh = jax.random.uniform(ks[3], (hidden_dim,), jnp.float32, -k_rnn, k_rnn)
    w_fc = jax.random.uniform(ks[4], (output_dim, hidden_dim), jnp.float32, -k_fc, k_fc)
    b_fc = jax.random.uniform(ks[5], (output_dim,), jnp.float32, -k_fc, k_fc)
    return (w_ih, w_hh, b_ih, b_hh, w_fc, b_fc)


def reference_forward(x_btd, params):
    """Pure-JAX f32 reference for correctness check."""
    w_ih, w_hh, b_ih, b_hh, w_fc, b_fc = params
    B, T, D = x_btd.shape
    H = w_hh.shape[0]
    h = jnp.zeros((B, H), jnp.float32)
    for t in range(T):
        h = jax.nn.relu(x_btd[:, t, :] @ w_ih.T + b_ih + h @ w_hh.T + b_hh)
    out = h @ w_fc.T + b_fc
    return out.reshape(B, 1, -1)


if __name__ == "__main__":
    key = jax.random.PRNGKey(0)
    k_x, k_p = jax.random.split(key)

    B, T = 2, 8  # small batch / seq; feature dims fixed by the module
    x = jax.random.normal(k_x, (B, T, INPUT_DIM), jnp.float32)
    params = init_params(k_p, INPUT_DIM, HIDDEN_DIM, OUTPUT_DIM)

    # One-time parameter packing (kept out of the per-call hot path).
    w_pack, b_pack = prepare_params(params)
    w_pack, b_pack = jax.block_until_ready((w_pack, b_pack))

    out = rnn_forward_jit(x, w_pack, b_pack, out_dim=OUTPUT_DIM)
    out = jax.block_until_ready(out)

    ref = reference_forward(x, params)
    assert out.shape == (B, 1, OUTPUT_DIM), out.shape
    # bf16 matmul operands (f32 accumulation) through an 8-step recurrence:
    # tolerance loosened vs. the pure-f32 check accordingly.
    assert jnp.allclose(out, ref, atol=3e-2, rtol=3e-2), "mismatch vs reference"

    print("KERNEL_OK")
</pallas_src>

<mosaic_0001>
module attributes {stable_mosaic.version = 11 : i64} {
  func.func @rnn_fc_kernel(%arg0: memref<64x28xbf16, #tpu.memory_space<vmem>>, %arg1: memref<384x128xbf16, #tpu.memory_space<vmem>>, %arg2: memref<2x128xf32, #tpu.memory_space<vmem>>, %arg3: memref<8x128xf32, #tpu.memory_space<vmem>>, %arg4: memref<64x128xbf16, #tpu.memory_space<vmem>>) attributes {dimension_semantics = [], scalar_prefetch = 0 : i64, scratch_operands = 1 : i64, tpu.core_type = #tpu.core_type<tc>} {
    %c0 = arith.constant 0 : index
    %c0_0 = arith.constant 0 : index
    %0 = vector.load %arg1[%c0, %c0_0] : memref<384x128xbf16, #tpu.memory_space<vmem>>, vector<128x128xbf16>
    %c128 = arith.constant 128 : index
    %c0_1 = arith.constant 0 : index
    %1 = vector.load %arg1[%c128, %c0_1] : memref<384x128xbf16, #tpu.memory_space<vmem>>, vector<128x128xbf16>
    %c256 = arith.constant 256 : index
    %c0_2 = arith.constant 0 : index
    %2 = vector.load %arg1[%c256, %c0_2] : memref<384x128xbf16, #tpu.memory_space<vmem>>, vector<128x128xbf16>
    %c0_3 = arith.constant 0 : index
    %c0_4 = arith.constant 0 : index
    %3 = vector.load %arg2[%c0_3, %c0_4] : memref<2x128xf32, #tpu.memory_space<vmem>>, vector<1x128xf32>
    %c1 = arith.constant 1 : index
    %c0_5 = arith.constant 0 : index
    %4 = vector.load %arg2[%c1, %c0_5] : memref<2x128xf32, #tpu.memory_space<vmem>>, vector<1x128xf32>
    %cst = arith.constant 0.000000e+00 : bf16
    %5 = vector.broadcast %cst : bf16 to vector<64x128xbf16>
    %c0_6 = arith.constant 0 : index
    %c0_7 = arith.constant 0 : index
    %6 = vector.load %arg4[%c0_6, %c0_7] : memref<64x128xbf16, #tpu.memory_space<vmem>>, vector<64x128xbf16>
    tpu.vector_store %arg4[%c0_6, %c0_7], %5 {strides = array<i32>} : memref<64x128xbf16, #tpu.memory_space<vmem>>, vector<64x128xbf16>,
    %c0_8 = arith.constant 0 : index
    %c0_9 = arith.constant 0 : index
    %7 = vector.load %arg0[%c0_8, %c0_9] : memref<64x28xbf16, #tpu.memory_space<vmem>>, vector<64x28xbf16>
    %c0_10 = arith.constant 0 : index
    %c0_11 = arith.constant 0 : index
    %8 = vector.load %arg4[%c0_10, %c0_11] : memref<64x128xbf16, #tpu.memory_space<vmem>>, vector<64x28xbf16>
    tpu.vector_store %arg4[%c0_10, %c0_11], %7 {strides = array<i32>} : memref<64x128xbf16, #tpu.memory_space<vmem>>, vector<64x28xbf16>,
    %c0_12 = arith.constant 0 : index
    %c0_13 = arith.constant 0 : index
    %9 = vector.load %arg4[%c0_12, %c0_13] : memref<64x128xbf16, #tpu.memory_space<vmem>>, vector<64x128xbf16>
    %cst_14 = arith.constant dense<0.000000e+00> : vector<64x128xf32>
    %10 = tpu.matmul %9, %0, %cst_14 {dimension_numbers = #tpu.dot_dimension_numbers<[1], [0], [0], [1], [0, 0, 1, 1], [], []>} : vector<64x128xbf16>, vector<128x128xbf16>, vector<64x128xf32> -> vector<64x128xf32>
    %11 = vector.broadcast %3 : vector<1x128xf32> to vector<64x128xf32>
    %12 = arith.addf %10, %11 : vector<64x128xf32>
    %13 = vector.extract_strided_slice %12 {offsets = [0, 0], sizes = [8, 128], strides = [1, 1]} : vector<64x128xf32> to vector<8x128xf32>
    %cst_15 = arith.constant 0.000000e+00 : f32
    %14 = vector.broadcast %cst_15 : f32 to vector<8x128xf32>
    %15 = arith.maximumf %13, %14 : vector<8x128xf32>
    %16 = arith.truncf %15 : vector<8x128xf32> to vector<8x128xbf16>
    %cst_16 = arith.constant dense<0.000000e+00> : vector<8x128xf32>
    %17 = tpu.matmul %16, %1, %cst_16 {dimension_numbers = #tpu.dot_dimension_numbers<[1], [0], [0], [1], [0, 0, 1, 1], [], []>} : vector<8x128xbf16>, vector<128x128xbf16>, vector<8x128xf32> -> vector<8x128xf32>
    %18 = vector.extract_strided_slice %12 {offsets = [8, 0], sizes = [8, 128], strides = [1, 1]} : vector<64x128xf32> to vector<8x128xf32>
    %19 = arith.addf %18, %17 : vector<8x128xf32>
    %cst_17 = arith.constant 0.000000e+00 : f32
    %20 = vector.broadcast %cst_17 : f32 to vector<8x128xf32>
    %21 = arith.maximumf %19, %20 : vector<8x128xf32>
    %22 = arith.truncf %21 : vector<8x128xf32> to vector<8x128xbf16>
    %cst_18 = arith.constant dense<0.000000e+00> : vector<8x128xf32>
    %23 = tpu.matmul %22, %1, %cst_18 {dimension_numbers = #tpu.dot_dimension_numbers<[1], [0], [0], [1], [0, 0, 1, 1], [], []>} : vector<8x128xbf16>, vector<128x128xbf16>, vector<8x128xf32> -> vector<8x128xf32>
    %24 = vector.extract_strided_slice %12 {offsets = [16, 0], sizes = [8, 128], strides = [1, 1]} : vector<64x128xf32> to vector<8x128xf32>
    %25 = arith.addf %24, %23 : vector<8x128xf32>
    %cst_19 = arith.constant 0.000000e+00 : f32
    %26 = vector.broadcast %cst_19 : f32 to vector<8x128xf32>
    %27 = arith.maximumf %25, %26 : vector<8x128xf32>
    %28 = arith.truncf %27 : vector<8x128xf32> to vector<8x128xbf16>
    %cst_20 = arith.constant dense<0.000000e+00> : vector<8x128xf32>
    %29 = tpu.matmul %28, %1, %cst_20 {dimension_numbers = #tpu.dot_dimension_numbers<[1], [0], [0], [1], [0, 0, 1, 1], [], []>} : vector<8x128xbf16>, vector<128x128xbf16>, vector<8x128xf32> -> vector<8x128xf32>
    %30 = vector.extract_strided_slice %12 {offsets = [24, 0], sizes = [8, 128], strides = [1, 1]} : vector<64x128xf32> to vector<8x128xf32>
    %31 = arith.addf %30, %29 : vector<8x128xf32>
    %cst_21 = arith.constant 0.000000e+00 : f32
    %32 = vector.broadcast %cst_21 : f32 to vector<8x128xf32>
    %33 = arith.maximumf %31, %32 : vector<8x128xf32>
    %34 = arith.truncf %33 : vector<8x128xf32> to vector<8x128xbf16>
    %cst_22 = arith.constant dense<0.000000e+00> : vector<8x128xf32>
    %35 = tpu.matmul %34, %1, %cst_22 {dimension_numbers = #tpu.dot_dimension_numbers<[1], [0], [0], [1], [0, 0, 1, 1], [], []>} : vector<8x128xbf16>, vector<128x128xbf16>, vector<8x128xf32> -> vector<8x128xf32>
    %36 = vector.extract_strided_slice %12 {offsets = [32, 0], sizes = [8, 128], strides = [1, 1]} : vector<64x128xf32> to vector<8x128xf32>
    %37 = arith.addf %36, %35 : vector<8x128xf32>
    %cst_23 = arith.constant 0.000000e+00 : f32
    %38 = vector.broadcast %cst_23 : f32 to vector<8x128xf32>
    %39 = arith.maximumf %37, %38 : vector<8x128xf32>
    %40 = arith.truncf %39 : vector<8x128xf32> to vector<8x128xbf16>
    %cst_24 = arith.constant dense<0.000000e+00> : vector<8x128xf32>
    %41 = tpu.matmul %40, %1, %cst_24 {dimension_numbers = #tpu.dot_dimension_numbers<[1], [0], [0], [1], [0, 0, 1, 1], [], []>} : vector<8x128xbf16>, vector<128x128xbf16>, vector<8x128xf32> -> vector<8x128xf32>
    %42 = vector.extract_strided_slice %12 {offsets = [40, 0], sizes = [8, 128], strides = [1, 1]} : vector<64x128xf32> to vector<8x128xf32>
    %43 = arith.addf %42, %41 : vector<8x128xf32>
    %cst_25 = arith.constant 0.000000e+00 : f32
    %44 = vector.broadcast %cst_25 : f32 to vector<8x128xf32>
    %45 = arith.maximumf %43, %44 : vector<8x128xf32>
    %46 = arith.truncf %45 : vector<8x128xf32> to vector<8x128xbf16>
    %cst_26 = arith.constant dense<0.000000e+00> : vector<8x128xf32>
    %47 = tpu.matmul %46, %1, %cst_26 {dimension_numbers = #tpu.dot_dimension_numbers<[1], [0], [0], [1], [0, 0, 1, 1], [], []>} : vector<8x128xbf16>, vector<128x128xbf16>, vector<8x128xf32> -> vector<8x128xf32>
    %48 = vector.extract_strided_slice %12 {offsets = [48, 0], sizes = [8, 128], strides = [1, 1]} : vector<64x128xf32> to vector<8x128xf32>
    %49 = arith.addf %48, %47 : vector<8x128xf32>
    %cst_27 = arith.constant 0.000000e+00 : f32
    %50 = vector.broadcast %cst_27 : f32 to vector<8x128xf32>
    %51 = arith.maximumf %49, %50 : vector<8x128xf32>
    %52 = arith.truncf %51 : vector<8x128xf32> to vector<8x128xbf16>
    %cst_28 = arith.constant dense<0.000000e+00> : vector<8x128xf32>
    %53 = tpu.matmul %52, %1, %cst_28 {dimension_numbers = #tpu.dot_dimension_numbers<[1], [0], [0], [1], [0, 0, 1, 1], [], []>} : vector<8x128xbf16>, vector<128x128xbf16>, vector<8x128xf32> -> vector<8x128xf32>
    %54 = vector.extract_strided_slice %12 {offsets = [56, 0], sizes = [8, 128], strides = [1, 1]} : vector<64x128xf32> to vector<8x128xf32>
    %55 = arith.addf %54, %53 : vector<8x128xf32>
    %cst_29 = arith.constant 0.000000e+00 : f32
    %56 = vector.broadcast %cst_29 : f32 to vector<8x128xf32>
    %57 = arith.maximumf %55, %56 : vector<8x128xf32>
    %58 = arith.truncf %57 : vector<8x128xf32> to vector<8x128xbf16>
    %cst_30 = arith.constant dense<0.000000e+00> : vector<8x128xf32>
    %59 = tpu.matmul %58, %2, %cst_30 {dimension_numbers = #tpu.dot_dimension_numbers<[1], [0], [0], [1], [0, 0, 1, 1], [], []>} : vector<8x128xbf16>, vector<128x128xbf16>, vector<8x128xf32> -> vector<8x128xf32>
    %60 = vector.broadcast %4 : vector<1x128xf32> to vector<8x128xf32>
    %61 = arith.addf %59, %60 : vector<8x128xf32>
    %c0_31 = arith.constant 0 : index
    %c0_32 = arith.constant 0 : index
    %62 = vector.load %arg3[%c0_31, %c0_32] : memref<8x128xf32, #tpu.memory_space<vmem>>, vector<8x128xf32>
    tpu.vector_store %arg3[%c0_31, %c0_32], %61 {strides = array<i32>} : memref<8x128xf32, #tpu.memory_space<vmem>>, vector<8x128xf32>,
    return
  }
}

</mosaic_0001>

<bundles_post_ra>
// kernel: rnn_model_forward.1
= control target key start
LH: loop header
LB: loop body
LE: loop exit
PB: predicated region body
PF: predicated region fallthrough
CT: control target
= control target key end

     0   :  { %8 = vsyncpa [#allocation4], 0  ;;  %s1046_s12 = smov [#allocation3]   ;;  %s1286_s0 = inlined_call_operand.vmem [shape: bf16[64,28], index: 0, kind: input, shape index: {}]   ;;  %s1287_s1 = inlined_call_operand.hbm [shape: bf16[384,128], index: 1, kind: input, shape index: {}]   ;;  %s1288_s2 = inlined_call_operand.vmem [shape: f32[2,128], index: 2, kind: input, shape index: {}]   ;;  %s1289_s3 = inlined_call_operand.vmem [shape: f32[8,128], index: 3, kind: output, shape index: {}]  }
   0x1   :  { %s16_s13 = sshll.u32 %s1046_s12, 4  ;;  %s1022_s16 = scalar_lea.hbm %s1287_s1, 3072  ;;  %s17_s13 = int_to_ptr.vmem [resolvable:$true] %s16_s13 }
   0x2   :  { %p1023_p0 = scmp.ne.s32.totalorder %s1287_s1, %s1022_s16  ;;  %p1026_p1 = scmp.lt.u32.totalorder %s1022_s16, %s1287_s1 }
   0x4   :  { %p1028_p2 = pnand %p1026_p1, %p1023_p0 }
   0x6   :  { %1031 = shalt.err (!%p1028_p2)
}
   0x7   :  { %s1032_s21 = scalar_lea.vmem %s17_s13, 3072  ;;  %p1037_p4 = scmp.lt.s32.totalorder %s17_s13, %s17_s13 }
   0x8   :  { %p1033_p3 = scmp.ne.s32.totalorder %s17_s13, %s1032_s21  ;;  %p1038_p5 = scmp.lt.s32.totalorder %s1032_s21, %s1032_s21 }
   0xa   :  { %p1039_p6 = por %p1038_p5, %p1037_p4 }
   0xc   :  { %p1040_p7 = pnand %p1039_p6, %p1033_p3 }
   0xe   :  { %1043 = shalt.err (!%p1040_p7)
}
   0xf   :  { %s1047_s22 = smov 64   ;;  %s1048_s23 = smov 4  }
  0x10   :  { %22 = dma.hbm_to_vmem [thread:$0]  %s1287_s1, 3072, %s17_s13, [#allocation4], %s1047_s22, %s1047_s22, %s1048_s23  }
  0x11   :  { %1044 = dma.done.wait [#allocation4], 3072  }
  0x12   :  { %1045 = vsyncadd [#allocation4], 4294964224  ;;  %v1049_v0 = vmov 0   ;;  %v1050_v1 = vmov 0.0   ;;  %v994_v2 = vld [vmem:[#allocation3] sm:$0xff]   ;;  %v995_v3 = vld [vmem:[#allocation3 + $0x8] sm:$0xff]  }
  0x13   :  { %79 = vst [vmem:[#allocation2] sm:$0xff] %v1049_v0  ;;  %80 = vst [vmem:[#allocation2 + $0x8] sm:$0xff] %v1049_v0  ;;  %828 = vmatprep.subr.bf16.mxu1 %v1050_v1  ;;  %804 = vmatprep.subr.bf16.mxu0 %v994_v2  ;;  %v996_v4 = vld [vmem:[#allocation3 + $0x10] sm:$0xff]   ;;  %v997_v5 = vld [vmem:[#allocation3 + $0x18] sm:$0xff]   ;;  %vm115_vm0 = vcmask 228352   ;;  %vm1051_vm1 = vmmov 0  }
  0x14   :  { %81 = vst [vmem:[#allocation2 + $0x10] sm:$0xff] %v1049_v0  ;;  %82 = vst [vmem:[#allocation2 + $0x18] sm:$0xff] %v1049_v0  ;;  %805 = vmatpush3.bf16.msra.mxu0 %v994_v2  ;;  %v1002_v6 = vld [vmem:[%s1286_s0] sm:$0xff]   ;;  %v1003_v7 = vld [vmem:[%s1286_s0 + $0x8] sm:$0xff]   ;;  %844 = vmatprep.mubr.msk.bf16.mxu1 %vm1051_vm1, %v1050_v1 }
  0x15   :  { %806 = vmatprep.subr.bf16.mxu0 %v995_v3  ;;  %116 = vst.msk [vmem:[#allocation2] sm:$0xff] %vm115_vm0, %v1002_v6  ;;  %v1092_v8 = vld [vmem:[#allocation3 + $0x40] sm:$0xff]   ;;  %117 = vst.msk [vmem:[#allocation2 + $0x8] sm:$0xff] %vm115_vm0, %v1003_v7  ;;  %v1096_v10 = vld [vmem:[#allocation3 + $0x48] sm:$0xff]  }
  0x16   :  { %v998_v9 = vld [vmem:[#allocation3 + $0x20] sm:$0xff]   ;;  %829 = vmatpush3.bf16.msra.mxu1 %v1092_v8  ;;  %v999_v11 = vld [vmem:[#allocation3 + $0x28] sm:$0xff]   ;;  %v1099_v12 = vld [vmem:[#allocation3 + $0x50] sm:$0xff]  }
  0x17   :  { %830 = vmatprep.subr.bf16.mxu1 %v1050_v1  ;;  %v1000_v14 = vld [vmem:[#allocation3 + $0x30] sm:$0xff]   ;;  %v1103_v15 = vld [vmem:[#allocation3 + $0x58] sm:$0xff]   ;;  %v1108_v17 = vld [vmem:[#allocation3 + $0x60] sm:$0xff]  }
  0x18   :  { %807 = vmatpush3.bf16.msra.mxu0 %v995_v3  ;;  %v1001_v16 = vld [vmem:[#allocation3 + $0x38] sm:$0xff]   ;;  %v1112_v18 = vld [vmem:[#allocation3 + $0x68] sm:$0xff]   ;;  %v1130_v20 = vld [vmem:[#allocation3 + $0x70] sm:$0xff]  }
  0x19   :  { %808 = vmatprep.subr.bf16.mxu0 %v996_v4  ;;  %v1136_v21 = vld [vmem:[#allocation3 + $0x78] sm:$0xff]   ;;  %v1012_v22 = vld [vmem:[%s1286_s0 + $0x10] sm:$0xff]   ;;  %v1157_v26 = vld [vmem:[%s1288_s2] ss:$0 sm:$0xff] }
  0x1a   :  { %831 = vmatpush3.bf16.msra.mxu1 %v1096_v10  ;;  %v1013_v23 = vld [vmem:[%s1286_s0 + $0x18] sm:$0xff]   ;;  %118 = vst.msk [vmem:[#allocation2 + $0x10] sm:$0xff] %vm115_vm0, %v1012_v22 }
  0x1b   :  { %832 = vmatprep.subr.bf16.mxu1 %v1050_v1  ;;  %119 = vst.msk [vmem:[#allocation2 + $0x18] sm:$0xff] %vm115_vm0, %v1013_v23 }
  0x1c   :  { %809 = vmatpush3.bf16.msra.mxu0 %v996_v4  ;;  %v120_v13 = vld [vmem:[#allocation2] sm:$0xff]  ;;  %v121_v19 = vld [vmem:[#allocation2 + $0x8] sm:$0xff] }
  0x1d   :  { %810 = vmatprep.subr.bf16.mxu0 %v997_v5  ;;  %820 = vmatprep.mubr.bf16.mxu0 %v120_v13 }
  0x1e   :  { %833 = vmatpush3.bf16.msra.mxu1 %v1099_v12 }
  0x1f   :  { %834 = vmatprep.subr.bf16.mxu1 %v1050_v1 }
  0x20   :  { %811 = vmatpush3.bf16.msra.mxu0 %v997_v5 }
  0x21   :  { %812 = vmatprep.subr.bf16.mxu0 %v998_v9  ;;  %v122_v24 = vld [vmem:[#allocation2 + $0x10] sm:$0xff] }
  0x22   :  { %835 = vmatpush3.bf16.msra.mxu1 %v1103_v15  ;;  %v123_v25 = vld [vmem:[#allocation2 + $0x18] sm:$0xff] }
  0x23   :  { %836 = vmatprep.subr.bf16.mxu1 %v1050_v1 }
  0x24   :  { %813 = vmatpush3.bf16.msra.mxu0 %v998_v9 }
  0x25   :  { %814 = vmatprep.subr.bf16.mxu0 %v999_v11 }
  0x26   :  { %837 = vmatpush3.bf16.msra.mxu1 %v1108_v17 }
  0x27   :  { %838 = vmatprep.subr.bf16.mxu1 %v1050_v1 }
  0x28   :  { %815 = vmatpush3.bf16.msra.mxu0 %v999_v11 }
  0x29   :  { %816 = vmatprep.subr.bf16.mxu0 %v1000_v14 }
  0x2a   :  { %839 = vmatpush3.bf16.msra.mxu1 %v1112_v18 }
  0x2b   :  { %840 = vmatprep.subr.bf16.mxu1 %v1050_v1 }
  0x2c   :  { %817 = vmatpush3.bf16.msra.mxu0 %v1000_v14 }
  0x2d   :  { %818 = vmatprep.subr.bf16.mxu0 %v1001_v16 }
  0x2e   :  { %841 = vmatpush3.bf16.msra.mxu1 %v1130_v20 }
  0x2f   :  { %842 = vmatprep.subr.bf16.mxu1 %v1050_v1 }
  0x30   :  { %819 = vmatpush3.bf16.msra.mxu0 %v1001_v16  ;;  %v1015_v16 = vld [vmem:[#allocation3 + $0x88] sm:$0xff]  }
  0x31   :  { %848 = vmatprep.subr.bf16.mxu0 %v1050_v1 }
  0x32   :  { %843 = vmatpush3.bf16.msra.mxu1 %v1136_v21 }
  0x33   :  { %821 = vmatmul.mubr.bf16.vlgmr.msra.gmra.mrb[0].mxu0 %v121_v19  ;;  %868 = vmatprep.subr.bf16.mxu1 %v1050_v1  ;;  %v1018_v19 = vld [vmem:[#allocation3 + $0xa0] sm:$0xff]  }
  0x34   :  { %849 = vmatpush3.bf16.msra.mxu0 %v1092_v8  ;;  %824 = vmatprep.mubr.bf16.mxu0 %v122_v24 }
  0x35   :  { %850 = vmatprep.subr.bf16.mxu0 %v1050_v1 }
  0x38   :  { %851 = vmatpush3.bf16.msra.mxu0 %v1096_v10 }
  0x39   :  { %852 = vmatprep.subr.bf16.mxu0 %v1050_v1 }
  0x3b   :  { %825 = vmatmul.mubr.bf16.gmra.mrb[4].mxu0 %v123_v25 }
  0x3c   :  { %853 = vmatpush3.bf16.msra.mxu0 %v1099_v12  ;;  %864 = vmatprep.mubr.msk.bf16.mxu0 %vm1051_vm1, %v1050_v1 }
  0x3d   :  { %854 = vmatprep.subr.bf16.mxu0 %v1050_v1 }
  0x40   :  { %855 = vmatpush3.bf16.msra.mxu0 %v1103_v15 }
  0x41   :  { %856 = vmatprep.subr.bf16.mxu0 %v1050_v1 }
  0x44   :  { %857 = vmatpush3.bf16.msra.mxu0 %v1108_v17 }
  0x45   :  { %858 = vmatprep.subr.bf16.mxu0 %v1050_v1 }
  0x48   :  { %859 = vmatpush3.bf16.msra.mxu0 %v1112_v18 }
  0x49   :  { %860 = vmatprep.subr.bf16.mxu0 %v1050_v1 }
  0x4c   :  { %861 = vmatpush3.bf16.msra.mxu0 %v1130_v20 }
  0x4d   :  { %862 = vmatprep.subr.bf16.mxu0 %v1050_v1 }
  0x50   :  { %863 = vmatpush3.bf16.msra.mxu0 %v1136_v21 }
  0x51   :  { %888 = vmatprep.subr.bf16.mxu0 %v1050_v1 }
 0x106   :  { %v822_v27 = vpop.f32.mrb[0].mxu0 }
 0x107   :  { %v210_v28 = vpop.f32.mrb[1].mxu0  ;;  %v219_v46 = vadd.f32 %v822_v27, %v1157_v26 }
 0x108   :  { %v211_v29 = vadd.f32 %v1157_v26, %v210_v28  ;;  %v1160_v30 = vpop.f32.mrb[2].mxu0 }
 0x109   :  { %v213_v31 = vpop.f32.mrb[3].mxu0  ;;  %v222_v54 = vadd.f32 %v1160_v30, %v1157_v26  ;;  %v1020_v30 = vld [vmem:[#allocation3 + $0xb0] sm:$0xff]  }
 0x10a   :  { %v241_v32 = vmax.f32 %v211_v29, 0.0  ;;  %v214_v38 = vadd.f32 %v1157_v26, %v213_v31  ;;  %v1021_v31 = vld [vmem:[#allocation3 + $0xb8] sm:$0xff]  }
 0x10c   :  { %v242_v33 = vpack.c.bf16 %v241_v32, %v241_v32 }
 0x10e   :  { %845 = vmatmul.mubr.bf16.vlgmr.msra.gmra.mrb[0].mxu1 %v242_v33  ;;  %v1180_v34 = vpop.f32.mrb[4].mxu0 }
 0x10f   :  { %869 = vmatpush3.bf16.msra.mxu1 %v1092_v8  ;;  %884 = vmatprep.mubr.msk.bf16.mxu1 %vm1051_vm1, %v1050_v1  ;;  %v1182_v35 = vpop.f32.mrb[5].mxu0 }
 0x110   :  { %870 = vmatprep.subr.bf16.mxu1 %v1050_v1  ;;  %v1184_v36 = vpop.f32.mrb[6].mxu0  ;;  %v227_v62 = vadd.f32 %v1157_v26, %v1182_v35 }
 0x111   :  { %v1186_v37 = vpop.f32.mrb[7].mxu0  ;;  %v238_v32 = vadd.f32 %v1184_v36, %v1157_v26 }
 0x112   :  { %v230_v7 = vadd.f32 %v1157_v26, %v1186_v37 }
 0x113   :  { %871 = vmatpush3.bf16.msra.mxu1 %v1096_v10 }
 0x114   :  { %872 = vmatprep.subr.bf16.mxu1 %v1050_v1 }
 0x117   :  { %873 = vmatpush3.bf16.msra.mxu1 %v1099_v12 }
 0x118   :  { %874 = vmatprep.subr.bf16.mxu1 %v1050_v1 }
 0x11b   :  { %875 = vmatpush3.bf16.msra.mxu1 %v1103_v15 }
 0x11c   :  { %876 = vmatprep.subr.bf16.mxu1 %v1050_v1 }
 0x11f   :  { %877 = vmatpush3.bf16.msra.mxu1 %v1108_v17 }
 0x120   :  { %878 = vmatprep.subr.bf16.mxu1 %v1050_v1 }
 0x123   :  { %879 = vmatpush3.bf16.msra.mxu1 %v1112_v18 }
 0x124   :  { %880 = vmatprep.subr.bf16.mxu1 %v1050_v1 }
 0x127   :  { %881 = vmatpush3.bf16.msra.mxu1 %v1130_v20 }
 0x128   :  { %882 = vmatprep.subr.bf16.mxu1 %v1050_v1 }
 0x12b   :  { %883 = vmatpush3.bf16.msra.mxu1 %v1136_v21 }
 0x12c   :  { %908 = vmatprep.subr.bf16.mxu1 %v1050_v1 }
 0x1e1   :  { %v325_v39 = vpop.f32.mrb[0].mxu1 }
 0x1e2   :  { %v331_v40 = vadd.f32 %v325_v39, %v214_v38  ;;  %v846_v41 = vpop.f32.mrb[1].mxu1 }
 0x1e3   :  { %v328_v42 = vpop.f32.mrb[2].mxu1  ;;  %v711_v41 = vld [vmem:[%s1288_s2 + $0x1] ss:$0 sm:$0xff] }
 0x1e4   :  { %v332_v43 = vmax.f32 %v331_v40, 0.0  ;;  %v847_v44 = vpop.f32.mrb[3].mxu1 }
 0x1e6   :  { %v333_v45 = vpack.c.bf16 %v332_v43, %v332_v43 }
 0x1e8   :  { %865 = vmatmul.mubr.bf16.vlgmr.msra.gmra.mrb[8].mxu0 %v333_v45 }
 0x1e9   :  { %889 = vmatpush3.bf16.msra.mxu0 %v1092_v8  ;;  %904 = vmatprep.mubr.msk.bf16.mxu0 %vm1051_vm1, %v1050_v1 }
 0x1ea   :  { %890 = vmatprep.subr.bf16.mxu0 %v1050_v1 }
 0x1ed   :  { %891 = vmatpush3.bf16.msra.mxu0 %v1096_v10 }
 0x1ee   :  { %892 = vmatprep.subr.bf16.mxu0 %v1050_v1 }
 0x1f1   :  { %893 = vmatpush3.bf16.msra.mxu0 %v1099_v12 }
 0x1f2   :  { %894 = vmatprep.subr.bf16.mxu0 %v1050_v1 }
 0x1f5   :  { %895 = vmatpush3.bf16.msra.mxu0 %v1103_v15 }
 0x1f6   :  { %896 = vmatprep.subr.bf16.mxu0 %v1050_v1 }
 0x1f9   :  { %897 = vmatpush3.bf16.msra.mxu0 %v1108_v17 }
 0x1fa   :  { %898 = vmatprep.subr.bf16.mxu0 %v1050_v1 }
 0x1fd   :  { %899 = vmatpush3.bf16.msra.mxu0 %v1112_v18 }
 0x1fe   :  { %900 = vmatprep.subr.bf16.mxu0 %v1050_v1 }
 0x201   :  { %901 = vmatpush3.bf16.msra.mxu0 %v1130_v20 }
 0x202   :  { %902 = vmatprep.subr.bf16.mxu0 %v1050_v1 }
 0x205   :  { %903 = vmatpush3.bf16.msra.mxu0 %v1136_v21 }
 0x206   :  { %928 = vmatprep.subr.bf16.mxu0 %v1050_v1 }
 0x2bb   :  { %v368_v47 = vpop.f32.mrb[8].mxu0 }
 0x2bc   :  { %v374_v48 = vadd.f32 %v368_v47, %v219_v46  ;;  %v866_v49 = vpop.f32.mrb[9].mxu0 }
 0x2bd   :  { %v371_v50 = vpop.f32.mrb[10].mxu0 }
 0x2be   :  { %v375_v51 = vmax.f32 %v374_v48, 0.0  ;;  %v867_v52 = vpop.f32.mrb[11].mxu0 }
 0x2c0   :  { %v376_v53 = vpack.c.bf16 %v375_v51, %v375_v51 }
 0x2c2   :  { %885 = vmatmul.mubr.bf16.vlgmr.msra.gmra.mrb[4].mxu1 %v376_v53 }
 0x2c3   :  { %909 = vmatpush3.bf16.msra.mxu1 %v1092_v8  ;;  %924 = vmatprep.mubr.msk.bf16.mxu1 %vm1051_vm1, %v1050_v1 }
 0x2c4   :  { %910 = vmatprep.subr.bf16.mxu1 %v1050_v1 }
 0x2c7   :  { %911 = vmatpush3.bf16.msra.mxu1 %v1096_v10 }
 0x2c8   :  { %912 = vmatprep.subr.bf16.mxu1 %v1050_v1 }
 0x2cb   :  { %913 = vmatpush3.bf16.msra.mxu1 %v1099_v12 }
 0x2cc   :  { %914 = vmatprep.subr.bf16.mxu1 %v1050_v1 }
 0x2cf   :  { %915 = vmatpush3.bf16.msra.mxu1 %v1103_v15 }
 0x2d0   :  { %916 = vmatprep.subr.bf16.mxu1 %v1050_v1 }
 0x2d3   :  { %917 = vmatpush3.bf16.msra.mxu1 %v1108_v17 }
 0x2d4   :  { %918 = vmatprep.subr.bf16.mxu1 %v1050_v1 }
 0x2d7   :  { %919 = vmatpush3.bf16.msra.mxu1 %v1112_v18 }
 0x2d8   :  { %920 = vmatprep.subr.bf16.mxu1 %v1050_v1 }
 0x2db   :  { %921 = vmatpush3.bf16.msra.mxu1 %v1130_v20 }
 0x2dc   :  { %922 = vmatprep.subr.bf16.mxu1 %v1050_v1 }
 0x2df   :  { %923 = vmatpush3.bf16.msra.mxu1 %v1136_v21 }
 0x2e0   :  { %948 = vmatprep.subr.bf16.mxu1 %v1050_v1 }
 0x395   :  { %v411_v55 = vpop.f32.mrb[4].mxu1 }
 0x396   :  { %v417_v56 = vadd.f32 %v411_v55, %v222_v54  ;;  %v886_v57 = vpop.f32.mrb[5].mxu1 }
 0x397   :  { %v414_v58 = vpop.f32.mrb[6].mxu1 }
 0x398   :  { %v418_v59 = vmax.f32 %v417_v56, 0.0  ;;  %v887_v60 = vpop.f32.mrb[7].mxu1 }
 0x39a   :  { %v419_v61 = vpack.c.bf16 %v418_v59, %v418_v59 }
 0x39c   :  { %905 = vmatmul.mubr.bf16.vlgmr.msra.gmra.mrb[12].mxu0 %v419_v61 }
 0x39d   :  { %929 = vmatpush3.bf16.msra.mxu0 %v1092_v8  ;;  %944 = vmatprep.mubr.msk.bf16.mxu0 %vm1051_vm1, %v1050_v1 }
 0x39e   :  { %930 = vmatprep.subr.bf16.mxu0 %v1050_v1 }
 0x3a1   :  { %931 = vmatpush3.bf16.msra.mxu0 %v1096_v10 }
 0x3a2   :  { %932 = vmatprep.subr.bf16.mxu0 %v1050_v1 }
 0x3a5   :  { %933 = vmatpush3.bf16.msra.mxu0 %v1099_v12 }
 0x3a6   :  { %934 = vmatprep.subr.bf16.mxu0 %v1050_v1 }
 0x3a9   :  { %935 = vmatpush3.bf16.msra.mxu0 %v1103_v15 }
 0x3aa   :  { %936 = vmatprep.subr.bf16.mxu0 %v1050_v1 }
 0x3ad   :  { %937 = vmatpush3.bf16.msra.mxu0 %v1108_v17 }
 0x3ae   :  { %938 = vmatprep.subr.bf16.mxu0 %v1050_v1 }
 0x3b1   :  { %939 = vmatpush3.bf16.msra.mxu0 %v1112_v18 }
 0x3b2   :  { %940 = vmatprep.subr.bf16.mxu0 %v1050_v1 }
 0x3b5   :  { %941 = vmatpush3.bf16.msra.mxu0 %v1130_v20 }
 0x3b6   :  { %942 = vmatprep.subr.bf16.mxu0 %v1050_v1 }
 0x3b9   :  { %943 = vmatpush3.bf16.msra.mxu0 %v1136_v21 }
 0x3ba   :  { %968 = vmatprep.subr.bf16.mxu0 %v1050_v1 }
 0x46f   :  { %v454_v63 = vpop.f32.mrb[12].mxu0 }
 0x470   :  { %v460_v0 = vadd.f32 %v454_v63, %v227_v62  ;;  %v906_v2 = vpop.f32.mrb[13].mxu0 }
 0x471   :  { %v457_v3 = vpop.f32.mrb[14].mxu0 }
 0x472   :  { %v461_v4 = vmax.f32 %v460_v0, 0.0  ;;  %v907_v5 = vpop.f32.mrb[15].mxu0 }
 0x474   :  { %v462_v6 = vpack.c.bf16 %v461_v4, %v461_v4 }
 0x476   :  { %925 = vmatmul.mubr.bf16.vlgmr.msra.gmra.mrb[8].mxu1 %v462_v6 }
 0x477   :  { %949 = vmatpush3.bf16.msra.mxu1 %v1092_v8  ;;  %964 = vmatprep.mubr.msk.bf16.mxu1 %vm1051_vm1, %v1050_v1 }
 0x478   :  { %950 = vmatprep.subr.bf16.mxu1 %v1050_v1 }
 0x47b   :  { %951 = vmatpush3.bf16.msra.mxu1 %v1096_v10 }
 0x47c   :  { %952 = vmatprep.subr.bf16.mxu1 %v1050_v1 }
 0x47f   :  { %953 = vmatpush3.bf16.msra.mxu1 %v1099_v12 }
 0x480   :  { %954 = vmatprep.subr.bf16.mxu1 %v1050_v1 }
 0x483   :  { %955 = vmatpush3.bf16.msra.mxu1 %v1103_v15  ;;  %v1014_v15 = vld [vmem:[#allocation3 + $0x80] sm:$0xff]  }
 0x484   :  { %956 = vmatprep.subr.bf16.mxu1 %v1050_v1 }
 0x487   :  { %957 = vmatpush3.bf16.msra.mxu1 %v1108_v17  ;;  %v1016_v17 = vld [vmem:[#allocation3 + $0x90] sm:$0xff]  }
 0x488   :  { %958 = vmatprep.subr.bf16.mxu1 %v1050_v1 }
 0x48b   :  { %959 = vmatpush3.bf16.msra.mxu1 %v1112_v18  ;;  %v1017_v18 = vld [vmem:[#allocation3 + $0x98] sm:$0xff]  }
 0x48c   :  { %960 = vmatprep.subr.bf16.mxu1 %v1050_v1 }
 0x48f   :  { %961 = vmatpush3.bf16.msra.mxu1 %v1130_v20  ;;  %v1019_v20 = vld [vmem:[#allocation3 + $0xa8] sm:$0xff]  }
 0x490   :  { %962 = vmatprep.subr.bf16.mxu1 %v1050_v1 }
 0x493   :  { %963 = vmatpush3.bf16.msra.mxu1 %v1136_v21  ;;  %v235_v21 = vadd.f32 %v1180_v34, %v1157_v26 }
 0x549   :  { %v497_v8 = vpop.f32.mrb[8].mxu1 }
 0x54a   :  { %v503_v9 = vadd.f32 %v497_v8, %v230_v7  ;;  %v926_v10 = vpop.f32.mrb[9].mxu1 }
 0x54b   :  { %v500_v11 = vpop.f32.mrb[10].mxu1 }
 0x54c   :  { %v504_v12 = vmax.f32 %v503_v9, 0.0  ;;  %v927_v13 = vpop.f32.mrb[11].mxu1 }
 0x54e   :  { %v505_v14 = vpack.c.bf16 %v504_v12, %v504_v12 }
 0x550   :  { %945 = vmatmul.mubr.bf16.vlgmr.msra.gmra.mrb[16].mxu0 %v505_v14 }
 0x551   :  { %984 = vmatprep.mubr.msk.bf16.mxu0 %vm1051_vm1, %v1050_v1  ;;  %969 = vmatpush3.bf16.msra.mxu0 %v1014_v15 }
 0x552   :  { %970 = vmatprep.subr.bf16.mxu0 %v1050_v1 }
 0x555   :  { %971 = vmatpush3.bf16.msra.mxu0 %v1015_v16 }
 0x556   :  { %972 = vmatprep.subr.bf16.mxu0 %v1050_v1 }
 0x559   :  { %973 = vmatpush3.bf16.msra.mxu0 %v1016_v17 }
 0x55a   :  { %974 = vmatprep.subr.bf16.mxu0 %v1050_v1 }
 0x55d   :  { %975 = vmatpush3.bf16.msra.mxu0 %v1017_v18 }
 0x55e   :  { %976 = vmatprep.subr.bf16.mxu0 %v1050_v1 }
 0x561   :  { %977 = vmatpush3.bf16.msra.mxu0 %v1018_v19 }
 0x562   :  { %978 = vmatprep.subr.bf16.mxu0 %v1050_v1 }
 0x565   :  { %979 = vmatpush3.bf16.msra.mxu0 %v1019_v20 }
 0x566   :  { %980 = vmatprep.subr.bf16.mxu0 %v1050_v1 }
 0x569   :  { %981 = vmatpush3.bf16.msra.mxu0 %v1020_v30 }
 0x56a   :  { %982 = vmatprep.subr.bf16.mxu0 %v1050_v1 }
 0x56d   :  { %983 = vmatpush3.bf16.msra.mxu0 %v1021_v31 }
 0x623   :  { %v540_v22 = vpop.f32.mrb[16].mxu0 }
 0x624   :  { %v546_v23 = vadd.f32 %v540_v22, %v235_v21  ;;  %v946_v24 = vpop.f32.mrb[17].mxu0 }
 0x625   :  { %v543_v25 = vpop.f32.mrb[18].mxu0 }
 0x626   :  { %v547_v27 = vmax.f32 %v546_v23, 0.0  ;;  %v947_v28 = vpop.f32.mrb[19].mxu0 }
 0x628   :  { %v548_v29 = vpack.c.bf16 %v547_v27, %v547_v27 }
 0x62a   :  { %965 = vmatmul.mubr.bf16.vlgmr.msra.gmra.mrb[12].mxu1 %v548_v29 }
 0x6fd   :  { %v583_v33 = vpop.f32.mrb[12].mxu1 }
 0x6fe   :  { %v589_v35 = vadd.f32 %v583_v33, %v238_v32  ;;  %v966_v34 = vpop.f32.mrb[13].mxu1 }
 0x6ff   :  { %v586_v37 = vpop.f32.mrb[14].mxu1 }
 0x700   :  { %v590_v38 = vmax.f32 %v589_v35, 0.0  ;;  %v967_v39 = vpop.f32.mrb[15].mxu1 }
 0x702   :  { %v591_v40 = vpack.c.bf16 %v590_v38, %v590_v38 }
 0x704   :  { %985 = vmatmul.mubr.bf16.vlgmr.msra.gmra.mrb[20].mxu0 %v591_v40 }
 0x7d7   :  { %v678_v42 = vpop.f32.mrb[20].mxu0 }
 0x7d8   :  { %v679_v43 = vadd.f32 %v711_v41, %v678_v42  ;;  %v986_v1 = vpop.f32.mrb[21].mxu0 }
 0x7d9   :  { %v681_v44 = vpop.f32.mrb[22].mxu0 }
 0x7da   :  { %684 = vst [vmem:[%s1289_s3] sm:$0xff] %v679_v43  ;;  %v987_v26 = vpop.f32.mrb[23].mxu0 }
 0x7db   :  { %689 = vsyncpa [#allocation4], 1 }

</bundles_post_ra>
